<compile_context>
chip_gen: v7x
topology: tpu7x:2x2x1
jax: 0.10.0
libtpu: 0.0.40
codegen_flags: <defaults>
</compile_context>

<pallas_src>
import math
import functools

import jax
import jax.numpy as jnp
from jax import lax
from jax.experimental import pallas as pl
from jax.experimental.pallas import tpu as pltpu


def _ffn_kernel(x_ref, w1_ref, b1_ref, w2_ref, b2_ref, o_ref, acc_ref):
    # x_ref:  (TM, dim_p)    row tile of flattened (batch*seq, dim) activations
    # w1_ref: (dim_p, TF)    fc1 weight chunk (columns [k*TF, (k+1)*TF))
    # b1_ref: (1, TF)        fc1 bias chunk
    # w2_ref: (TF, dim_p)    fc2 weight chunk (rows  [k*TF, (k+1)*TF))
    # b2_ref: (1, dim_p)     fc2 bias (added once at finalize)
    # acc_ref:(TM, dim_p)    f32 accumulator, resident across the ff axis
    k = pl.program_id(1)

    @pl.when(k == 0)
    def _():
        acc_ref[...] = jnp.zeros_like(acc_ref)

    # fc1 chunk on the MXU: native-dtype operands, f32 accumulation.
    h = jnp.dot(x_ref[...], w1_ref[...], preferred_element_type=jnp.float32)
    h = h + b1_ref[...].astype(jnp.float32)

    # exact gelu: x * 0.5 * (1 + erf(x / sqrt(2))), computed in f32 (VPU/EUP).
    g = h * (0.5 * (1.0 + lax.erf(h * (1.0 / math.sqrt(2.0)))))

    # fc2 chunk, accumulated into the resident f32 scratch.
    acc_ref[...] += jnp.dot(g.astype(w2_ref.dtype), w2_ref[...],
                            preferred_element_type=jnp.float32)

    @pl.when(k == pl.num_programs(1) - 1)
    def _():
        o_ref[...] = (acc_ref[...] + b2_ref[...].astype(jnp.float32)
                      ).astype(o_ref.dtype)


def _round_up(n, m):
    return pl.cdiv(n, m) * m


@functools.partial(jax.jit, static_argnames=("row_tile", "ff_tile"))
def position_wise_ffn(x, w1, b1, w2, b2, *, row_tile=512, ff_tile=1024):
    """x: (B, S, dim); w1: (dim, dim_ff); w2: (dim_ff, dim). Returns (B, S, dim)."""
    B, S, dim = x.shape
    dim_ff = w1.shape[1]
    rows = B * S
    itemsize = jnp.dtype(x.dtype).itemsize

    # Lane-dense / MXU-friendly padded sizes (zero padding is exact here:
    # gelu(0) == 0, so padded dim_ff columns contribute nothing, and padded
    # rows / dim columns are sliced away at the end).
    dim_p = _round_up(dim, 128)
    tm = min(row_tile, _round_up(rows, 128))
    rows_p = _round_up(rows, tm)
    tf = min(ff_tile, _round_up(dim_ff, 128))
    dim_ff_p = _round_up(dim_ff, tf)

    x2d = jnp.pad(x.reshape(rows, dim), ((0, rows_p - rows), (0, dim_p - dim)))
    w1_p = jnp.pad(w1, ((0, dim_p - dim), (0, dim_ff_p - dim_ff)))
    b1_p = jnp.pad(b1.reshape(1, dim_ff), ((0, 0), (0, dim_ff_p - dim_ff)))
    w2_p = jnp.pad(w2, ((0, dim_ff_p - dim_ff), (0, dim_p - dim)))
    b2_p = jnp.pad(b2.reshape(1, dim), ((0, 0), (0, dim_p - dim)))

    grid = (rows_p // tm, dim_ff_p // tf)

    # Advisory cost hint for the XLA scheduler around the custom call.
    cost = pl.CostEstimate(
        flops=4 * rows * dim * dim_ff,          # two matmuls, 2 flops per MAC
        transcendentals=rows * dim_ff,          # erf
        bytes_accessed=(x2d.size + w1_p.size + w2_p.size) * itemsize
        + (b1_p.size + b2_p.size) * itemsize
        + rows_p * dim_p * itemsize,
    )

    out2d = pl.pallas_call(
        _ffn_kernel,
        out_shape=jax.ShapeDtypeStruct((rows_p, dim_p), x.dtype),
        grid_spec=pltpu.PrefetchScalarGridSpec(
            num_scalar_prefetch=0,
            grid=grid,
            in_specs=[
                pl.BlockSpec((tm, dim_p), lambda i, k: (i, 0)),   # x row tile
                pl.BlockSpec((dim_p, tf), lambda i, k: (0, k)),   # W1 chunk
                pl.BlockSpec((1, tf), lambda i, k: (0, k)),       # b1 chunk
                pl.BlockSpec((tf, dim_p), lambda i, k: (k, 0)),   # W2 chunk
                pl.BlockSpec((1, dim_p), lambda i, k: (0, 0)),    # b2
            ],
            out_specs=pl.BlockSpec((tm, dim_p), lambda i, k: (i, 0)),
            scratch_shapes=[pltpu.VMEM((tm, dim_p), jnp.float32)],
        ),
        compiler_params=pltpu.CompilerParams(
            dimension_semantics=("parallel", "arbitrary"),
            vmem_limit_bytes=64 * 1024 * 1024,
        ),
        cost_estimate=cost,
    )(x2d, w1_p, b1_p, w2_p, b2_p)

    return out2d[:rows, :dim].reshape(B, S, dim)


def _reference_ffn(x, w1, b1, w2, b2):
    h = jnp.dot(x, w1) + b1
    g = h * 0.5 * (1.0 + lax.erf(h / jnp.sqrt(2.0)))
    return jnp.dot(g, w2) + b2


def _make_params(key, dim, dim_ff, dtype=jnp.float32):
    # Deterministic init mimicking nn.Linear: U(-1/sqrt(fan_in), 1/sqrt(fan_in)).
    # Stored as (in_dim, out_dim) = transpose of PyTorch's (out, in) layout.
    kw1, kb1, kw2, kb2 = jax.random.split(key, 4)
    bound1 = 1.0 / math.sqrt(dim)
    w1 = jax.random.uniform(kw1, (dim, dim_ff), minval=-bound1, maxval=bound1,
                            dtype=dtype)
    b1 = jax.random.uniform(kb1, (dim_ff,), minval=-bound1, maxval=bound1,
                            dtype=dtype)
    bound2 = 1.0 / math.sqrt(dim_ff)
    w2 = jax.random.uniform(kw2, (dim_ff, dim), minval=-bound2, maxval=bound2,
                            dtype=dtype)
    b2 = jax.random.uniform(kb2, (dim,), minval=-bound2, maxval=bound2,
                            dtype=dtype)
    return w1, b1, w2, b2


if __name__ == "__main__":
    key = jax.random.PRNGKey(0)

    # Test 1: small shapes consistent with the module: batch=2, seq=8, dim=32, dim_ff=64
    B, S, dim, dim_ff = 2, 8, 32, 64
    k0, k1, k2, k3 = jax.random.split(key, 4)
    x = jax.random.normal(k0, (B, S, dim), dtype=jnp.float32)
    w1, b1, w2, b2 = _make_params(k1, dim, dim_ff)

    y = position_wise_ffn(x, w1, b1, w2, b2)
    y = jax.block_until_ready(y)
    y_ref = _reference_ffn(x, w1, b1, w2, b2)
    assert y.shape == (B, S, dim)
    assert jnp.allclose(y, y_ref, atol=1e-5, rtol=1e-5), "mismatch vs reference (test 1)"

    # Test 2: ragged (non-multiple-of-128) shapes to exercise the padding path.
    B2, S2, dim2, dim_ff2 = 3, 5, 48, 80
    x2 = jax.random.normal(k2, (B2, S2, dim2), dtype=jnp.float32)
    w1b, b1b, w2b, b2b = _make_params(k3, dim2, dim_ff2)

    y2 = position_wise_ffn(x2, w1b, b1b, w2b, b2b)
    y2 = jax.block_until_ready(y2)
    y2_ref = _reference_ffn(x2, w1b, b1b, w2b, b2b)
    assert y2.shape == (B2, S2, dim2)
    assert jnp.allclose(y2, y2_ref, atol=1e-4, rtol=1e-4), "mismatch vs reference (test 2)"

    print("KERNEL_OK")
</pallas_src>

<mosaic_0001>
module attributes {stable_mosaic.version = 11 : i64} {
  func.func @_ffn_kernel(%arg0: i32, %arg1: i32, %arg2: memref<128x128xf32, #tpu.memory_space<vmem>>, %arg3: memref<128x128xf32, #tpu.memory_space<vmem>>, %arg4: memref<1x128xf32, #tpu.memory_space<vmem>>, %arg5: memref<128x128xf32, #tpu.memory_space<vmem>>, %arg6: memref<1x128xf32, #tpu.memory_space<vmem>>, %arg7: memref<128x128xf32, #tpu.memory_space<vmem>>, %arg8: memref<128x128xf32, #tpu.memory_space<vmem>>) attributes {dimension_semantics = [#tpu.dimension_semantics<parallel>, #tpu.dimension_semantics<arbitrary>], iteration_bounds = array<i64: 1, 1>, scalar_prefetch = 0 : i64, scratch_operands = 1 : i64, tpu.core_type = #tpu.core_type<tc>, window_params = [{transform_indices = @transform_0, window_bounds = array<i64: 128, 128>}, {transform_indices = @transform_1, window_bounds = array<i64: 128, 128>}, {transform_indices = @transform_2, window_bounds = array<i64: 1, 128>}, {transform_indices = @transform_3, window_bounds = array<i64: 128, 128>}, {pipeline_mode = #tpu.pipeline_mode<synchronous>, transform_indices = @transform_4, window_bounds = array<i64: 1, 128>}, {transform_indices = @transform_5, window_bounds = array<i64: 128, 128>}]} {
    %c0_i32 = arith.constant 0 : i32
    %0 = arith.cmpi eq, %arg1, %c0_i32 : i32
    %1 = arith.extui %0 : i1 to i32
    %c0_i32_0 = arith.constant 0 : i32
    %2 = arith.cmpi ne, %1, %c0_i32_0 : i32
    scf.if %2 {
      %cst_18 = arith.constant 0.000000e+00 : f32
      %25 = vector.broadcast %cst_18 : f32 to vector<128x128xf32>
      %c0_19 = arith.constant 0 : index
      %c0_20 = arith.constant 0 : index
      %26 = vector.load %arg8[%c0_19, %c0_20] : memref<128x128xf32, #tpu.memory_space<vmem>>, vector<128x128xf32>
      tpu.vector_store %arg8[%c0_19, %c0_20], %25 {strides = array<i32>} : memref<128x128xf32, #tpu.memory_space<vmem>>, vector<128x128xf32>,
    } else {
    }
    %c0 = arith.constant 0 : index
    %c0_1 = arith.constant 0 : index
    %3 = vector.load %arg2[%c0, %c0_1] : memref<128x128xf32, #tpu.memory_space<vmem>>, vector<128x128xf32>
    %c0_2 = arith.constant 0 : index
    %c0_3 = arith.constant 0 : index
    %4 = vector.load %arg3[%c0_2, %c0_3] : memref<128x128xf32, #tpu.memory_space<vmem>>, vector<128x128xf32>
    %cst = arith.constant dense<0.000000e+00> : vector<128x128xf32>
    %5 = tpu.matmul %3, %4, %cst {dimension_numbers = #tpu.dot_dimension_numbers<[1], [0], [0], [1], [0, 0, 1, 1], [], []>} : vector<128x128xf32>, vector<128x128xf32>, vector<128x128xf32> -> vector<128x128xf32>
    %c0_4 = arith.constant 0 : index
    %c0_5 = arith.constant 0 : index
    %6 = vector.load %arg4[%c0_4, %c0_5] : memref<1x128xf32, #tpu.memory_space<vmem>>, vector<1x128xf32>
    %7 = vector.broadcast %6 : vector<1x128xf32> to vector<128x128xf32>
    %8 = arith.addf %5, %7 : vector<128x128xf32>
    %cst_6 = arith.constant 0.707106769 : f32
    %9 = vector.broadcast %cst_6 : f32 to vector<128x128xf32>
    %10 = arith.mulf %8, %9 : vector<128x128xf32>
    %11 = math.erf %10 : vector<128x128xf32>
    %cst_7 = arith.constant 1.000000e+00 : f32
    %12 = vector.broadcast %cst_7 : f32 to vector<128x128xf32>
    %13 = arith.addf %12, %11 : vector<128x128xf32>
    %cst_8 = arith.constant 5.000000e-01 : f32
    %14 = vector.broadcast %cst_8 : f32 to vector<128x128xf32>
    %15 = arith.mulf %14, %13 : vector<128x128xf32>
    %16 = arith.mulf %8, %15 : vector<128x128xf32>
    %c0_9 = arith.constant 0 : index
    %c0_10 = arith.constant 0 : index
    %17 = vector.load %arg8[%c0_9, %c0_10] : memref<128x128xf32, #tpu.memory_space<vmem>>, vector<128x128xf32>
    %c0_11 = arith.constant 0 : index
    %c0_12 = arith.constant 0 : index
    %18 = vector.load %arg5[%c0_11, %c0_12] : memref<128x128xf32, #tpu.memory_space<vmem>>, vector<128x128xf32>
    %cst_13 = arith.constant dense<0.000000e+00> : vector<128x128xf32>
    %19 = tpu.matmul %16, %18, %cst_13 {dimension_numbers = #tpu.dot_dimension_numbers<[1], [0], [0], [1], [0, 0, 1, 1], [], []>} : vector<128x128xf32>, vector<128x128xf32>, vector<128x128xf32> -> vector<128x128xf32>
    %20 = arith.addf %17, %19 : vector<128x128xf32>
    %c0_14 = arith.constant 0 : index
    %c0_15 = arith.constant 0 : index
    %21 = vector.load %arg8[%c0_14, %c0_15] : memref<128x128xf32, #tpu.memory_space<vmem>>, vector<128x128xf32>
    tpu.vector_store %arg8[%c0_14, %c0_15], %20 {strides = array<i32>} : memref<128x128xf32, #tpu.memory_space<vmem>>, vector<128x128xf32>,
    %c0_i32_16 = arith.constant 0 : i32
    %22 = arith.cmpi eq, %arg1, %c0_i32_16 : i32
    %23 = arith.extui %22 : i1 to i32
    %c0_i32_17 = arith.constant 0 : i32
    %24 = arith.cmpi ne, %23, %c0_i32_17 : i32
    scf.if %24 {
      %c0_18 = arith.constant 0 : index
      %c0_19 = arith.constant 0 : index
      %25 = vector.load %arg8[%c0_18, %c0_19] : memref<128x128xf32, #tpu.memory_space<vmem>>, vector<128x128xf32>
      %c0_20 = arith.constant 0 : index
      %c0_21 = arith.constant 0 : index
      %26 = vector.load %arg6[%c0_20, %c0_21] : memref<1x128xf32, #tpu.memory_space<vmem>>, vector<1x128xf32>
      %27 = vector.broadcast %26 : vector<1x128xf32> to vector<128x128xf32>
      %28 = arith.addf %25, %27 : vector<128x128xf32>
      %c0_22 = arith.constant 0 : index
      %c0_23 = arith.constant 0 : index
      %29 = vector.load %arg7[%c0_22, %c0_23] : memref<128x128xf32, #tpu.memory_space<vmem>>, vector<128x128xf32>
      tpu.vector_store %arg7[%c0_22, %c0_23], %28 {strides = array<i32>} : memref<128x128xf32, #tpu.memory_space<vmem>>, vector<128x128xf32>,
    } else {
    }
    return
  }
  func.func @transform_0(%arg0: i32, %arg1: i32) -> (i32, i32) {
    %c0_i32 = arith.constant 0 : i32
    %c0_i32_0 = arith.constant 0 : i32
    return %arg0, %c0_i32 : i32, i32
  }
  func.func @transform_1(%arg0: i32, %arg1: i32) -> (i32, i32) {
    %c0_i32 = arith.constant 0 : i32
    %c0_i32_0 = arith.constant 0 : i32
    return %c0_i32, %arg1 : i32, i32
  }
  func.func @transform_2(%arg0: i32, %arg1: i32) -> (i32, i32) {
    %c0_i32 = arith.constant 0 : i32
    %c0_i32_0 = arith.constant 0 : i32
    return %c0_i32, %arg1 : i32, i32
  }
  func.func @transform_3(%arg0: i32, %arg1: i32) -> (i32, i32) {
    %c0_i32 = arith.constant 0 : i32
    %c0_i32_0 = arith.constant 0 : i32
    return %arg1, %c0_i32 : i32, i32
  }
  func.func @transform_4(%arg0: i32, %arg1: i32) -> (i32, i32) {
    %c0_i32 = arith.constant 0 : i32
    %c0_i32_0 = arith.constant 0 : i32
    %c0_i32_1 = arith.constant 0 : i32
    return %c0_i32, %c0_i32_0 : i32, i32
  }
  func.func @transform_5(%arg0: i32, %arg1: i32) -> (i32, i32) {
    %c0_i32 = arith.constant 0 : i32
    %c0_i32_0 = arith.constant 0 : i32
    return %arg0, %c0_i32 : i32, i32
  }
}

</mosaic_0001>

<bundles_post_ra>
// kernel: position_wise_ffn.1
= control target key start
LH: loop header
LB: loop body
LE: loop exit
PB: predicated region body
PF: predicated region fallthrough
CT: control target
= control target key end

     0   :  { %10 = vsyncpa [#allocation4], 0  ;;  %s1264_s0 = inlined_call_operand.hbm [shape: f32[128,128], index: 0, kind: input, shape index: {}]   ;;  %s1265_s1 = inlined_call_operand.hbm [shape: f32[128,128], index: 1, kind: input, shape index: {}]   ;;  %s1266_s2 = inlined_call_operand.hbm [shape: f32[1,128], index: 2, kind: input, shape index: {}]   ;;  %s1267_s3 = inlined_call_operand.hbm [shape: f32[128,128], index: 3, kind: input, shape index: {}]   ;;  %s1268_s4 = inlined_call_operand.hbm [shape: f32[1,128], index: 4, kind: input, shape index: {}]   ;;  %s1269_s5 = inlined_call_operand.hbm [shape: f32[128,128], index: 5, kind: output, shape index: {}]  }
   0x1   :  { %11 = vsyncpa [#allocation7], 0 }
   0x2   :  { %12 = vsyncpa [#allocation10], 0 }
   0x3   :  { %13 = vsyncpa [#allocation5], 0  ;;  %s1077_s18 = smov [#allocation6]   ;;  %s1078_s20 = smov [#allocation9]  }
   0x4   :  { %s31_s19 = sshll.u32 %s1077_s18, 4  ;;  %s53_s21 = sshll.u32 %s1078_s20, 4  ;;  %s32_s19 = int_to_ptr.vmem [resolvable:$true] %s31_s19  ;;  %s1115_s21 = int_to_ptr.vmem [resolvable:$true] %s53_s21 }
   0x5   :  { %s937_s24 = scalar_lea.hbm %s1265_s1, 2048 }
   0x6   :  { %p938_p0 = scmp.ne.s32.totalorder %s1265_s1, %s937_s24  ;;  %p941_p1 = scmp.lt.u32.totalorder %s937_s24, %s1265_s1 }
   0x8   :  { %p943_p2 = pnand %p941_p1, %p938_p0 }
   0xa   :  { %946 = shalt.err (!%p943_p2)
}
   0xb   :  { %s947_s29 = scalar_lea.vmem %s32_s19, 2048  ;;  %p952_p4 = scmp.lt.s32.totalorder %s32_s19, %s32_s19 }
   0xc   :  { %p948_p3 = scmp.ne.s32.totalorder %s32_s19, %s947_s29  ;;  %p953_p5 = scmp.lt.s32.totalorder %s947_s29, %s947_s29 }
   0xe   :  { %p954_p6 = por %p953_p5, %p952_p4 }
  0x10   :  { %p955_p7 = pnand %p954_p6, %p948_p3 }
  0x12   :  { %958 = shalt.err (!%p955_p7)
}
  0x13   :  { %s1079_s30 = smov 128   ;;  %s1080_s6 = smov 8  }
  0x14   :  { %37 = dma.hbm_to_vmem [thread:$0]  %s1265_s1, 2048, %s32_s19, [#allocation7], %s1079_s30, %s1079_s30, %s1080_s6  }
  0x15   :  { %s959_s11 = scalar_lea.hbm %s1267_s3, 2048 }
  0x16   :  { %p960_p8 = scmp.ne.s32.totalorder %s1267_s3, %s959_s11  ;;  %p963_p9 = scmp.lt.u32.totalorder %s959_s11, %s1267_s3 }
  0x18   :  { %p965_p10 = pnand %p963_p9, %p960_p8 }
  0x1a   :  { %968 = shalt.err (!%p965_p10)
}
  0x1b   :  { %s969_s16 = scalar_lea.vmem %s1115_s21, 2048  ;;  %p974_p12 = scmp.lt.s32.totalorder %s1115_s21, %s1115_s21 }
  0x1c   :  { %p970_p11 = scmp.ne.s32.totalorder %s1115_s21, %s969_s16  ;;  %p975_p13 = scmp.lt.s32.totalorder %s969_s16, %s969_s16 }
  0x1e   :  { %p976_p0 = por %p975_p13, %p974_p12 }
  0x20   :  { %p977_p1 = pnand %p976_p0, %p970_p11 }
  0x22   :  { %980 = shalt.err (!%p977_p1)
}
  0x23   :  { %59 = dma.hbm_to_vmem [thread:$0]  %s1267_s3, 2048, %s1115_s21, [#allocation10], %s1079_s30, %s1079_s30, %s1080_s6  }
  0x24   :  { %s1081_s18 = smov [#allocation3]   ;;  %s1082_s20 = smov [#allocation8]  }
  0x25   :  { %s19_s19 = sshll.u32 %s1081_s18, 4  ;;  %s44_s22 = sshll.u32 %s1082_s20, 4  ;;  %s20_s19 = int_to_ptr.vmem [resolvable:$true] %s19_s19  ;;  %s45_s22 = int_to_ptr.vmem [resolvable:$true] %s44_s22 }
  0x26   :  { %s981_s25 = scalar_lea.hbm %s1264_s0, 2048 }
  0x27   :  { %p982_p2 = scmp.ne.s32.totalorder %s1264_s0, %s981_s25  ;;  %p985_p3 = scmp.lt.u32.totalorder %s981_s25, %s1264_s0 }
  0x29   :  { %p987_p4 = pnand %p985_p3, %p982_p2 }
  0x2b   :  { %990 = shalt.err (!%p987_p4)
}
  0x2c   :  { %s991_s3 = scalar_lea.vmem %s20_s19, 2048  ;;  %p996_p6 = scmp.lt.s32.totalorder %s20_s19, %s20_s19 }
  0x2d   :  { %p992_p5 = scmp.ne.s32.totalorder %s20_s19, %s991_s3  ;;  %p997_p7 = scmp.lt.s32.totalorder %s991_s3, %s991_s3 }
  0x2f   :  { %p998_p8 = por %p997_p7, %p996_p6 }
  0x31   :  { %p999_p9 = pnand %p998_p8, %p992_p5 }
  0x33   :  { %1002 = shalt.err (!%p999_p9)
}
  0x34   :  { %25 = dma.hbm_to_vmem [thread:$0]  %s1264_s0, 2048, %s20_s19, [#allocation4], %s1079_s30, %s1079_s30, %s1080_s6  }
  0x35   :  { %s1003_s10 = scalar_lea.hbm %s1266_s2, 16 }
  0x36   :  { %p1004_p10 = scmp.ne.s32.totalorder %s1266_s2, %s1003_s10  ;;  %p1007_p11 = scmp.lt.u32.totalorder %s1003_s10, %s1266_s2 }
  0x38   :  { %p1009_p12 = pnand %p1007_p11, %p1004_p10 }
  0x3a   :  { %1012 = shalt.err (!%p1009_p12)
}
  0x3b   :  { %s1013_s15 = scalar_lea.vmem %s45_s22, 16  ;;  %s1017_s16 = scalar_lea.vmem %s45_s22, 32 }
  0x3c   :  { %p1014_p13 = scmp.ne.s32.totalorder %s45_s22, %s1013_s15  ;;  %p1018_p0 = scmp.lt.s32.totalorder %s45_s22, %s45_s22 }
  0x3d   :  { %p1019_p1 = scmp.lt.s32.totalorder %s1017_s16, %s1013_s15 }
  0x3f   :  { %p1020_p2 = por %p1019_p1, %p1018_p0 }
  0x41   :  { %p1021_p3 = pnand %p1020_p2, %p1014_p13 }
  0x43   :  { %1024 = shalt.err (!%p1021_p3)
}
  0x44   :  { %47 = dma.hbm_to_vmem [thread:$0]  %s1266_s2, 16, %s45_s22, [#allocation7]  }
  0x45   :  { %s1083_s17 = smov [#allocation11]   ;;  %s1025_s23 = scalar_lea.hbm %s1268_s4, 16 }
  0x46   :  { %s66_s18 = sshll.u32 %s1083_s17, 4  ;;  %p1026_p4 = scmp.ne.s32.totalorder %s1268_s4, %s1025_s23  ;;  %s67_s18 = int_to_ptr.vmem [resolvable:$true] %s66_s18 }
  0x47   :  { %p1029_p5 = scmp.lt.u32.totalorder %s1025_s23, %s1268_s4 }
  0x49   :  { %p1031_p6 = pnand %p1029_p5, %p1026_p4 }
  0x4b   :  { %1034 = shalt.err (!%p1031_p6)
}
  0x4c   :  { %s1035_s28 = scalar_lea.vmem %s67_s18, 16  ;;  %s1039_s2 = scalar_lea.vmem %s67_s18, 32 }
  0x4d   :  { %p1036_p7 = scmp.ne.s32.totalorder %s67_s18, %s1035_s28  ;;  %p1040_p8 = scmp.lt.s32.totalorder %s67_s18, %s67_s18 }
  0x4e   :  { %p1041_p9 = scmp.lt.s32.totalorder %s1039_s2, %s1035_s28 }
  0x50   :  { %p1042_p10 = por %p1041_p9, %p1040_p8 }
  0x52   :  { %p1043_p11 = pnand %p1042_p10, %p1036_p7 }
  0x54   :  { %1046 = shalt.err (!%p1043_p11)
}
  0x55   :  { %69 = dma.hbm_to_vmem [thread:$0]  %s1268_s4, 16, %s67_s18, [#allocation10]  }
  0x56   :  { %1069 = dma.done.wait [#allocation4], 2048  }
  0x57   :  { %1070 = vsyncadd [#allocation4], 4294965248 }
  0x58   :  { %1071 = dma.done.wait [#allocation7], 2064  }
  0x59   :  { %1072 = vsyncadd [#allocation7], 4294965232 }
  0x5a   :  { %1073 = dma.done.wait [#allocation10], 2064  }
  0x5b   :  { %1074 = vsyncadd [#allocation10], 4294965232  ;;  %v121_v0 = vld [vmem:[#allocation6] sm:$0xff]  ;;  %v122_v1 = vld [vmem:[#allocation6 + $0x8] sm:$0xff]  ;;  %s1084_s4 = smov [#allocation12]  }
  0x5c   :  { %v123_v2 = vld [vmem:[#allocation6 + $0x10] sm:$0xff]  ;;  %v833_v3 = vpack.c.bf16 %v122_v1, %v121_v0  ;;  %v124_v4 = vld [vmem:[#allocation6 + $0x18] sm:$0xff]  ;;  %v125_v6 = vld [vmem:[#allocation6 + $0x20] sm:$0xff]  ;;  %s641_s3 = sshll.u32 %s1084_s4, 4  ;;  %s642_s3 = int_to_ptr.vmem [resolvable:$true] %s641_s3 }
  0x5d   :  { %v837_v5 = vpack.c.bf16 %v124_v4, %v123_v2  ;;  %v126_v7 = vld [vmem:[#allocation6 + $0x28] sm:$0xff]  ;;  %v105_v9 = vld [vmem:[#allocation3] sm:$0xff]  ;;  %v127_v10 = vld [vmem:[#allocation6 + $0x30] sm:$0xff]  ;;  %s1047_s21 = scalar_lea.vmem %s642_s3, 2048  ;;  %p1052_p13 = scmp.lt.s32.totalorder %s642_s3, %s642_s3 }
  0x5e   :  { %834 = vmatprep.subr.bf16.mxu0 %v833_v3  ;;  %v841_v8 = vpack.c.bf16 %v126_v7, %v125_v6  ;;  %v128_v11 = vld [vmem:[#allocation6 + $0x38] sm:$0xff]  ;;  %753 = vmatprep.mubr.f32.mxu0 %v105_v9  ;;  %v129_v13 = vld [vmem:[#allocation6 + $0x40] sm:$0xff]  ;;  %v130_v14 = vld [vmem:[#allocation6 + $0x48] sm:$0xff]  ;;  %p1048_p12 = scmp.ne.s32.totalorder %s642_s3, %s1047_s21  ;;  %p1053_p0 = scmp.lt.s32.totalorder %s1047_s21, %s1047_s21 }
  0x5f   :  { %836 = vmatpush3.bf16.msra.mxu0 %v833_v3  ;;  %v845_v12 = vpack.c.bf16 %v128_v11, %v127_v10  ;;  %v385_v15 = vld [vmem:[#allocation9] sm:$0xff]  ;;  %v386_v16 = vld [vmem:[#allocation9 + $0x8] sm:$0xff]  ;;  %v387_v17 = vld [vmem:[#allocation9 + $0x10] sm:$0xff]  ;;  %v849_v21 = vpack.c.bf16 %v130_v14, %v129_v13 }
  0x60   :  { %838 = vmatprep.subr.bf16.mxu0 %v837_v5  ;;  %v388_v18 = vld [vmem:[#allocation9 + $0x18] sm:$0xff]  ;;  %v865_v19 = vpack.c.bf16 %v386_v16, %v385_v15  ;;  %v131_v22 = vld [vmem:[#allocation6 + $0x50] sm:$0xff]  ;;  %v134_v26 = vld [vmem:[#allocation6 + $0x68] sm:$0xff]  ;;  %p1054_p1 = por %p1053_p0, %p1052_p13 }
  0x61   :  { %v869_v20 = vpack.c.bf16 %v388_v18, %v387_v17  ;;  %v132_v23 = vld [vmem:[#allocation6 + $0x58] sm:$0xff]  ;;  %v133_v25 = vld [vmem:[#allocation6 + $0x60] sm:$0xff]  ;;  %v135_v28 = vld [vmem:[#allocation6 + $0x70] sm:$0xff] }
  0x62   :  { %866 = vmatprep.subr.bf16.mxu1 %v865_v19  ;;  %v853_v24 = vpack.c.bf16 %v132_v23, %v131_v22  ;;  %v857_v27 = vpack.c.bf16 %v134_v26, %v133_v25  ;;  %v136_v29 = vld [vmem:[#allocation6 + $0x78] sm:$0xff]  ;;  %v106_v31 = vld [vmem:[#allocation3 + $0x8] sm:$0xff]  ;;  %v107_v32 = vld [vmem:[#allocation3 + $0x10] sm:$0xff]  ;;  %p1055_p2 = pnand %p1054_p1, %p1048_p12 }
  0x63   :  { %840 = vmatpush3.bf16.msra.mxu0 %v837_v5  ;;  %868 = vmatpush3.bf16.msra.mxu1 %v865_v19  ;;  %v861_v30 = vpack.c.bf16 %v136_v29, %v135_v28  ;;  %v108_v33 = vld [vmem:[#allocation3 + $0x18] sm:$0xff]  ;;  %v109_v34 = vld [vmem:[#allocation3 + $0x20] sm:$0xff]  ;;  %v110_v35 = vld [vmem:[#allocation3 + $0x28] sm:$0xff] }
  0x64   :  { %842 = vmatprep.subr.bf16.mxu0 %v841_v8  ;;  %870 = vmatprep.subr.bf16.mxu1 %v869_v20  ;;  %v111_v36 = vld [vmem:[#allocation3 + $0x30] sm:$0xff]  ;;  %v112_v37 = vld [vmem:[#allocation3 + $0x38] sm:$0xff]  ;;  %v113_v38 = vld [vmem:[#allocation3 + $0x40] sm:$0xff] }
  0x65   :  { %v114_v39 = vld [vmem:[#allocation3 + $0x48] sm:$0xff]  ;;  %v115_v40 = vld [vmem:[#allocation3 + $0x50] sm:$0xff]  ;;  %v116_v41 = vld [vmem:[#allocation3 + $0x58] sm:$0xff] }
  0x66   :  { %v117_v42 = vld [vmem:[#allocation3 + $0x60] sm:$0xff]  ;;  %v118_v43 = vld [vmem:[#allocation3 + $0x68] sm:$0xff]  ;;  %v119_v44 = vld [vmem:[#allocation3 + $0x70] sm:$0xff] }
  0x67   :  { %844 = vmatpush3.bf16.msra.mxu0 %v841_v8  ;;  %872 = vmatpush3.bf16.msra.mxu1 %v869_v20  ;;  %v120_v45 = vld [vmem:[#allocation3 + $0x78] sm:$0xff]  ;;  %v389_v46 = vld [vmem:[#allocation9 + $0x20] sm:$0xff]  ;;  %v390_v47 = vld [vmem:[#allocation9 + $0x28] sm:$0xff] }
  0x68   :  { %846 = vmatprep.subr.bf16.mxu0 %v845_v12  ;;  %v873_v48 = vpack.c.bf16 %v390_v47, %v389_v46  ;;  %v391_v49 = vld [vmem:[#allocation9 + $0x30] sm:$0xff]  ;;  %v392_v50 = vld [vmem:[#allocation9 + $0x38] sm:$0xff]  ;;  %v393_v52 = vld [vmem:[#allocation9 + $0x40] sm:$0xff] }
  0x69   :  { %v877_v51 = vpack.c.bf16 %v392_v50, %v391_v49  ;;  %v394_v53 = vld [vmem:[#allocation9 + $0x48] sm:$0xff]  ;;  %v395_v55 = vld [vmem:[#allocation9 + $0x50] sm:$0xff]  ;;  %v396_v56 = vld [vmem:[#allocation9 + $0x58] sm:$0xff] }
  0x6a   :  { %874 = vmatprep.subr.bf16.mxu1 %v873_v48  ;;  %v881_v54 = vpack.c.bf16 %v394_v53, %v393_v52  ;;  %v885_v57 = vpack.c.bf16 %v396_v56, %v395_v55  ;;  %v397_v58 = vld [vmem:[#allocation9 + $0x60] sm:$0xff]  ;;  %v398_v59 = vld [vmem:[#allocation9 + $0x68] sm:$0xff]  ;;  %v399_v61 = vld [vmem:[#allocation9 + $0x70] sm:$0xff] }
  0x6b   :  { %848 = vmatpush3.bf16.msra.mxu0 %v845_v12  ;;  %876 = vmatpush3.bf16.msra.mxu1 %v873_v48  ;;  %v889_v60 = vpack.c.bf16 %v398_v59, %v397_v58  ;;  %v400_v62 = vld [vmem:[#allocation9 + $0x78] sm:$0xff] }
  0x6c   :  { %850 = vmatprep.subr.bf16.mxu0 %v849_v21  ;;  %878 = vmatprep.subr.bf16.mxu1 %v877_v51  ;;  %v893_v63 = vpack.c.bf16 %v400_v62, %v399_v61  ;;  %v1191_v0 = vld [vmem:[#allocation8] ss:$0 sm:$0xff] }
  0x6f   :  { %852 = vmatpush3.bf16.msra.mxu0 %v849_v21  ;;  %880 = vmatpush3.bf16.msra.mxu1 %v877_v51 }
  0x70   :  { %854 = vmatprep.subr.bf16.mxu0 %v853_v24  ;;  %882 = vmatprep.subr.bf16.mxu1 %v881_v54 }
  0x73   :  { %856 = vmatpush3.bf16.msra.mxu0 %v853_v24  ;;  %884 = vmatpush3.bf16.msra.mxu1 %v881_v54 }
  0x74   :  { %858 = vmatprep.subr.bf16.mxu0 %v857_v27  ;;  %886 = vmatprep.subr.bf16.mxu1 %v885_v57 }
  0x77   :  { %860 = vmatpush3.bf16.msra.mxu0 %v857_v27  ;;  %888 = vmatpush3.bf16.msra.mxu1 %v885_v57 }
  0x78   :  { %862 = vmatprep.subr.bf16.mxu0 %v861_v30  ;;  %890 = vmatprep.subr.bf16.mxu1 %v889_v60 }
  0x7b   :  { %864 = vmatpush3.bf16.msra.mxu0 %v861_v30  ;;  %892 = vmatpush3.bf16.msra.mxu1 %v889_v60 }
  0x7c   :  { %894 = vmatprep.subr.bf16.mxu1 %v893_v63 }
  0x7e   :  { %754 = vmatmul.mubr.f32.vlgmr.msra.gmra.mrb[0].mxu0 %v106_v31 }
  0x7f   :  { %756 = vmatprep.mubr.f32.mxu0 %v107_v32  ;;  %896 = vmatpush3.bf16.msra.mxu1 %v893_v63 }
  0x82   :  { %757 = vmatmul.mubr.f32.gmra.mrb[2].mxu0 %v108_v33 }
  0x83   :  { %759 = vmatprep.mubr.f32.mxu0 %v109_v34 }
  0x86   :  { %760 = vmatmul.mubr.f32.gmra.mrb[4].mxu0 %v110_v35 }
  0x87   :  { %762 = vmatprep.mubr.f32.mxu0 %v111_v36 }
  0x8a   :  { %763 = vmatmul.mubr.f32.gmra.mrb[6].mxu0 %v112_v37 }
  0x8b   :  { %765 = vmatprep.mubr.f32.mxu0 %v113_v38 }
  0x8e   :  { %766 = vmatmul.mubr.f32.gmra.mrb[8].mxu0 %v114_v39 }
  0x8f   :  { %768 = vmatprep.mubr.f32.mxu0 %v115_v40 }
  0x92   :  { %769 = vmatmul.mubr.f32.gmra.mrb[10].mxu0 %v116_v41 }
  0x93   :  { %771 = vmatprep.mubr.f32.mxu0 %v117_v42 }
  0x96   :  { %772 = vmatmul.mubr.f32.gmra.mrb[12].mxu0 %v118_v43 }
  0x97   :  { %774 = vmatprep.mubr.f32.mxu0 %v119_v44 }
  0x9a   :  { %775 = vmatmul.mubr.f32.gmra.mrb[14].mxu0 %v120_v45 }
 0x151   :  { %v755_v1 = vpop.f32.mrb[0].mxu0 }
 0x152   :  { %v216_v2 = vadd.f32 %v755_v1, %v1191_v0  ;;  %v210_v3 = vpop.f32.mrb[1].mxu0 }
 0x153   :  { %v211_v4 = vadd.f32 %v1191_v0, %v210_v3 }
 0x154   :  { %v290_v5 = vmul.f32 0.70710677, %v216_v2 }
 0x155   :  { %v289_v6 = vmul.f32 0.70710677, %v211_v4  ;;  %v758_v7 = vpop.f32.mrb[2].mxu0 }
 0x156   :  { %905 = verf.f32 %v290_v5  ;;  %v1196_v8 = vadd.f32 %v758_v7, %v1191_v0  ;;  %v220_v9 = vpop.f32.mrb[3].mxu0 }
 0x157   :  { %907 = verf.f32 %v289_v6  ;;  %v221_v10 = vadd.f32 %v1191_v0, %v220_v9 }
 0x158   :  { %v292_v11 = vmul.f32 0.70710677, %v1196_v8 }
 0x159   :  { %v291_v12 = vmul.f32 0.70710677, %v221_v10  ;;  %v761_v13 = vpop.f32.mrb[4].mxu0 }
 0x15a   :  { %909 = verf.f32 %v292_v11  ;;  %v1201_v14 = vadd.f32 %v761_v13, %v1191_v0  ;;  %v230_v15 = vpop.f32.mrb[5].mxu0 }
 0x15b   :  { %911 = verf.f32 %v291_v12  ;;  %v1204_v16 = vadd.f32 %v1191_v0, %v230_v15 }
 0x15c   :  { %v294_v17 = vmul.f32 0.70710677, %v1201_v14 }
 0x15d   :  { %v293_v18 = vmul.f32 0.70710677, %v1204_v16  ;;  %v764_v19 = vpop.f32.mrb[6].mxu0 }
 0x15e   :  { %913 = verf.f32 %v294_v17  ;;  %v1209_v20 = vadd.f32 %v764_v19, %v1191_v0  ;;  %v240_v21 = vpop.f32.mrb[7].mxu0 }
 0x15f   :  { %915 = verf.f32 %v293_v18  ;;  %v1212_v22 = vadd.f32 %v1191_v0, %v240_v21 }
 0x160   :  { %v906_v23 = vpop.eup %905  ;;  %v296_v24 = vmul.f32 0.70710677, %v1209_v20 }
 0x161   :  { %v908_v25 = vpop.eup %907  ;;  %v322_v26 = vadd.f32 1.0, %v906_v23  ;;  %v295_v27 = vmul.f32 0.70710677, %v1212_v22  ;;  %v767_v28 = vpop.f32.mrb[8].mxu0 }
 0x162   :  { %917 = verf.f32 %v296_v24  ;;  %v1217_v29 = vadd.f32 %v767_v28, %v1191_v0  ;;  %v250_v30 = vpop.f32.mrb[9].mxu0  ;;  %v321_v31 = vadd.f32 1.0, %v908_v25 }
 0x163   :  { %v338_v32 = vmul.f32 0.5, %v322_v26  ;;  %919 = verf.f32 %v295_v27  ;;  %v1220_v33 = vadd.f32 %v1191_v0, %v250_v30 }
 0x164   :  { %v910_v34 = vpop.eup %909  ;;  %v298_v35 = vmul.f32 0.70710677, %v1217_v29  ;;  %v337_v36 = vmul.f32 0.5, %v321_v31 }
 0x165   :  { %v912_v37 = vpop.eup %911  ;;  %v324_v38 = vadd.f32 1.0, %v910_v34  ;;  %v297_v39 = vmul.f32 0.70710677, %v1220_v33  ;;  %v770_v40 = vpop.f32.mrb[10].mxu0  ;;  %v354_v45 = vmul.f32 %v338_v32, %v216_v2 }
 0x166   :  { %v323_v41 = vadd.f32 1.0, %v912_v37  ;;  %921 = verf.f32 %v298_v35  ;;  %v1225_v42 = vadd.f32 %v770_v40, %v1191_v0  ;;  %v260_v43 = vpop.f32.mrb[11].mxu0  ;;  %v353_v44 = vmul.f32 %v337_v36, %v211_v4 }
 0x167   :  { %v340_v46 = vmul.f32 0.5, %v324_v38  ;;  %923 = verf.f32 %v297_v39  ;;  %v1228_v47 = vadd.f32 %v1191_v0, %v260_v43 }
 0x168   :  { %v914_v48 = vpop.eup %913  ;;  %v339_v49 = vmul.f32 0.5, %v323_v41  ;;  %v300_v50 = vmul.f32 0.70710677, %v1225_v42  ;;  %809 = vmatprep.mubr.f32.mxu1 %v353_v44 }
 0x169   :  { %v916_v51 = vpop.eup %915  ;;  %v326_v52 = vadd.f32 1.0, %v914_v48  ;;  %v299_v53 = vmul.f32 0.70710677, %v1228_v47  ;;  %v773_v54 = vpop.f32.mrb[12].mxu0  ;;  %810 = vmatmul.mubr.f32.vlgmr.msra.gmra.mrb[0].mxu1 %v354_v45  ;;  %v356_v59 = vmul.f32 %v340_v46, %v1196_v8 }
 0x16a   :  { %v355_v55 = vmul.f32 %v339_v49, %v221_v10  ;;  %v325_v56 = vadd.f32 1.0, %v916_v51  ;;  %925 = verf.f32 %v300_v50  ;;  %v1233_v57 = vadd.f32 %v773_v54, %v1191_v0  ;;  %v270_v58 = vpop.f32.mrb[13].mxu0 }
 0x16b   :  { %v342_v60 = vmul.f32 0.5, %v326_v52  ;;  %927 = verf.f32 %v299_v53  ;;  %v271_v61 = vadd.f32 %v1191_v0, %v270_v58 }
 0x16c   :  { %v918_v62 = vpop.eup %917  ;;  %v341_v63 = vmul.f32 0.5, %v325_v56  ;;  %v302_v1 = vmul.f32 0.70710677, %v1233_v57  ;;  %812 = vmatprep.mubr.f32.mxu1 %v355_v55 }
 0x16d   :  { %v920_v2 = vpop.eup %919  ;;  %v328_v3 = vadd.f32 1.0, %v918_v62  ;;  %v301_v4 = vmul.f32 0.70710677, %v271_v61  ;;  %v776_v5 = vpop.f32.mrb[14].mxu0  ;;  %813 = vmatmul.mubr.f32.gmra.mrb[2].mxu1 %v356_v59  ;;  %v358_v10 = vmul.f32 %v342_v60, %v1201_v14 }
 0x16e   :  { %v357_v6 = vmul.f32 %v341_v63, %v1204_v16  ;;  %v327_v7 = vadd.f32 1.0, %v920_v2  ;;  %929 = verf.f32 %v302_v1  ;;  %v286_v8 = vadd.f32 %v776_v5, %v1191_v0  ;;  %v280_v9 = vpop.f32.mrb[15].mxu0 }
 0x16f   :  { %v344_v11 = vmul.f32 0.5, %v328_v3  ;;  %931 = verf.f32 %v301_v4  ;;  %v281_v12 = vadd.f32 %v1191_v0, %v280_v9 }
 0x170   :  { %v922_v13 = vpop.eup %921  ;;  %v343_v15 = vmul.f32 0.5, %v327_v7  ;;  %v304_v17 = vmul.f32 0.70710677, %v286_v8  ;;  %815 = vmatprep.mubr.f32.mxu1 %v357_v6 }
 0x171   :  { %v924_v18 = vpop.eup %923  ;;  %v330_v19 = vadd.f32 1.0, %v922_v13  ;;  %v303_v21 = vmul.f32 0.70710677, %v281_v12  ;;  %816 = vmatmul.mubr.f32.gmra.mrb[4].mxu1 %v358_v10  ;;  %v360_v24 = vmul.f32 %v344_v11, %v1209_v20 }
 0x172   :  { %v359_v16 = vmul.f32 %v343_v15, %v1212_v22  ;;  %v329_v23 = vadd.f32 1.0, %v924_v18  ;;  %933 = verf.f32 %v304_v17 }
 0x173   :  { %v346_v25 = vmul.f32 0.5, %v330_v19  ;;  %935 = verf.f32 %v303_v21 }
 0x174   :  { %v926_v14 = vpop.eup %925  ;;  %v345_v26 = vmul.f32 0.5, %v329_v23  ;;  %818 = vmatprep.mubr.f32.mxu1 %v359_v16 }
 0x175   :  { %v928_v0 = vpop.eup %927  ;;  %v332_v27 = vadd.f32 1.0, %v926_v14  ;;  %819 = vmatmul.mubr.f32.gmra.mrb[6].mxu1 %v360_v24  ;;  %v362_v31 = vmul.f32 %v346_v25, %v1217_v29 }
 0x176   :  { %v361_v28 = vmul.f32 %v345_v26, %v1220_v33  ;;  %v331_v30 = vadd.f32 1.0, %v928_v0 }
 0x177   :  { %v348_v32 = vmul.f32 0.5, %v332_v27 }
 0x178   :  { %v930_v34 = vpop.eup %929  ;;  %v347_v22 = vmul.f32 0.5, %v331_v30  ;;  %821 = vmatprep.mubr.f32.mxu1 %v361_v28 }
 0x179   :  { %v932_v35 = vpop.eup %931  ;;  %v334_v36 = vadd.f32 1.0, %v930_v34  ;;  %822 = vmatmul.mubr.f32.gmra.mrb[8].mxu1 %v362_v31  ;;  %v364_v38 = vmul.f32 %v348_v32, %v1225_v42  ;;  %v656_v42 = vld [vmem:[#allocation11] ss:$0 sm:$0xff] }
 0x17a   :  { %v363_v20 = vmul.f32 %v347_v22, %v1228_v47  ;;  %v333_v37 = vadd.f32 1.0, %v932_v35 }
 0x17b   :  { %v350_v39 = vmul.f32 0.5, %v334_v36 }
 0x17c   :  { %v934_v40 = vpop.eup %933  ;;  %v349_v41 = vmul.f32 0.5, %v333_v37  ;;  %824 = vmatprep.mubr.f32.mxu1 %v363_v20 }
 0x17d   :  { %v936_v33 = vpop.eup %935  ;;  %v336_v43 = vadd.f32 1.0, %v934_v40  ;;  %825 = vmatmul.mubr.f32.gmra.mrb[10].mxu1 %v364_v38  ;;  %v366_v45 = vmul.f32 %v350_v39, %v1233_v57 }
 0x17e   :  { %v365_v29 = vmul.f32 %v349_v41, %v271_v61  ;;  %v335_v44 = vadd.f32 1.0, %v936_v33 }
 0x17f   :  { %v352_v46 = vmul.f32 0.5, %v336_v43 }
 0x180   :  { %v351_v48 = vmul.f32 0.5, %v335_v44  ;;  %827 = vmatprep.mubr.f32.mxu1 %v365_v29 }
 0x181   :  { %828 = vmatmul.mubr.f32.gmra.mrb[12].mxu1 %v366_v45  ;;  %v368_v47 = vmul.f32 %v352_v46, %v286_v8 }
 0x182   :  { %v367_v49 = vmul.f32 %v351_v48, %v281_v12 }
 0x184   :  { %830 = vmatprep.mubr.f32.mxu1 %v367_v49 }
 0x185   :  { %831 = vmatmul.mubr.f32.gmra.mrb[14].mxu1 %v368_v47 }
 0x23c   :  { %v811_v50 = vpop.f32.mrb[0].mxu1 }
 0x23d   :  { %v605_v51 = vadd.f32 %v811_v50, %v656_v42  ;;  %v467_v52 = vpop.f32.mrb[1].mxu1 }
 0x23e   :  { %v604_v53 = vadd.f32 %v656_v42, %v467_v52 }
 0x23f   :  { %621 = vst [vmem:[#allocation12 + $0x8] sm:$0xff] %v605_v51 }
 0x240   :  { %620 = vst [vmem:[#allocation12] sm:$0xff] %v604_v53  ;;  %v814_v54 = vpop.f32.mrb[2].mxu1 }
 0x241   :  { %v607_v55 = vadd.f32 %v814_v54, %v656_v42  ;;  %v477_v56 = vpop.f32.mrb[3].mxu1 }
 0x242   :  { %v606_v58 = vadd.f32 %v656_v42, %v477_v56 }
 0x243   :  { %623 = vst [vmem:[#allocation12 + $0x18] sm:$0xff] %v607_v55 }
 0x244   :  { %622 = vst [vmem:[#allocation12 + $0x10] sm:$0xff] %v606_v58  ;;  %v817_v57 = vpop.f32.mrb[4].mxu1 }
 0x245   :  { %v609_v59 = vadd.f32 %v817_v57, %v656_v42  ;;  %v487_v60 = vpop.f32.mrb[5].mxu1 }
 0x246   :  { %v608_v61 = vadd.f32 %v656_v42, %v487_v60 }
 0x247   :  { %625 = vst [vmem:[#allocation12 + $0x28] sm:$0xff] %v609_v59 }
 0x248   :  { %624 = vst [vmem:[#allocation12 + $0x20] sm:$0xff] %v608_v61  ;;  %v820_v62 = vpop.f32.mrb[6].mxu1 }
 0x249   :  { %v611_v63 = vadd.f32 %v820_v62, %v656_v42  ;;  %v497_v1 = vpop.f32.mrb[7].mxu1 }
 0x24a   :  { %v610_v2 = vadd.f32 %v656_v42, %v497_v1 }
 0x24b   :  { %627 = vst [vmem:[#allocation12 + $0x38] sm:$0xff] %v611_v63 }
 0x24c   :  { %626 = vst [vmem:[#allocation12 + $0x30] sm:$0xff] %v610_v2  ;;  %v823_v3 = vpop.f32.mrb[8].mxu1 }
 0x24d   :  { %v613_v4 = vadd.f32 %v823_v3, %v656_v42  ;;  %v507_v5 = vpop.f32.mrb[9].mxu1 }
 0x24e   :  { %v612_v6 = vadd.f32 %v656_v42, %v507_v5 }
 0x24f   :  { %629 = vst [vmem:[#allocation12 + $0x48] sm:$0xff] %v613_v4 }
 0x250   :  { %628 = vst [vmem:[#allocation12 + $0x40] sm:$0xff] %v612_v6  ;;  %v826_v7 = vpop.f32.mrb[10].mxu1 }
 0x251   :  { %v615_v8 = vadd.f32 %v826_v7, %v656_v42  ;;  %v517_v9 = vpop.f32.mrb[11].mxu1 }
 0x252   :  { %v614_v10 = vadd.f32 %v656_v42, %v517_v9 }
 0x253   :  { %631 = vst [vmem:[#allocation12 + $0x58] sm:$0xff] %v615_v8 }
 0x254   :  { %630 = vst [vmem:[#allocation12 + $0x50] sm:$0xff] %v614_v10  ;;  %v829_v11 = vpop.f32.mrb[12].mxu1 }
 0x255   :  { %v617_v12 = vadd.f32 %v829_v11, %v656_v42  ;;  %v527_v13 = vpop.f32.mrb[13].mxu1 }
 0x256   :  { %v616_v15 = vadd.f32 %v656_v42, %v527_v13 }
 0x257   :  { %633 = vst [vmem:[#allocation12 + $0x68] sm:$0xff] %v617_v12 }
 0x258   :  { %632 = vst [vmem:[#allocation12 + $0x60] sm:$0xff] %v616_v15  ;;  %v832_v17 = vpop.f32.mrb[14].mxu1 }
 0x259   :  { %v619_v18 = vadd.f32 %v832_v17, %v656_v42  ;;  %v537_v19 = vpop.f32.mrb[15].mxu1 }
 0x25a   :  { %v618_v21 = vadd.f32 %v656_v42, %v537_v19 }
 0x25b   :  { %635 = vst [vmem:[#allocation12 + $0x78] sm:$0xff] %v619_v18 }
 0x25c   :  { %634 = vst [vmem:[#allocation12 + $0x70] sm:$0xff] %v618_v21 }
 0x25d   :  { %1058 = shalt.err (!%p1055_p2)
}
 0x25e   :  { %s1059_s9 = scalar_lea.hbm %s1269_s5, 2048 }
 0x25f   :  { %p1060_p3 = scmp.ne.s32.totalorder %s1269_s5, %s1059_s9  ;;  %p1063_p4 = scmp.lt.u32.totalorder %s1059_s9, %s1269_s5 }
 0x261   :  { %p1065_p5 = pnand %p1063_p4, %p1060_p3 }
 0x263   :  { %1068 = shalt.err (!%p1065_p5)
}
 0x264   :  { %647 = dma.vmem_to_hbm [thread:$0]  %s642_s3, 2048, %s1269_s5, [#allocation5], %s1079_s30, %s1079_s30, %s1080_s6  }
 0x265   :  { %1075 = dma.done.wait [#allocation5], 2048  }
 0x266   :  { %1076 = vsyncadd [#allocation5], 4294965248 }
 0x267   :  { %651 = vsyncpa [#allocation4], 1 }
 0x268   :  { %652 = vsyncpa [#allocation7], 1 }
 0x269   :  { %653 = vsyncpa [#allocation10], 1 }
 0x26a   :  { %654 = vsyncpa [#allocation5], 1 }

</bundles_post_ra>
